<compile_context>
chip_gen: v6e
topology: v6e:2x2x1
jax: 0.10.0
libtpu: 0.0.40
codegen_flags: <defaults>
</compile_context>

<pallas_src>
import functools

import jax
import jax.numpy as jnp
from jax.experimental import pallas as pl
from jax.experimental.pallas import tpu as pltpu

LANE = 128
SUBLANE = 8


def _round_up(v, m):
    return ((v + m - 1) // m) * m


def _mlp_kernel(x_ref,
                w1_ref, b1_ref,
                w2_ref, b2_ref,
                w22_ref, b22_ref,
                w3_ref, b3_ref,
                o_ref):
    # Cast the streamed f32 input to bf16 at the matmul boundary (MXU operands bf16,
    # accumulation f32; bias add + ReLU stay in f32 -> exact and free under MXU/DMA slack).
    x = x_ref[...].astype(jnp.bfloat16)
    # fc1 + ReLU
    h = jnp.dot(x, w1_ref[...], preferred_element_type=jnp.float32)
    h = jnp.maximum(h + b1_ref[...], 0.0).astype(jnp.bfloat16)
    # fc2 + ReLU
    h = jnp.dot(h, w2_ref[...], preferred_element_type=jnp.float32)
    h = jnp.maximum(h + b2_ref[...], 0.0).astype(jnp.bfloat16)
    # fc2_2 + ReLU
    h = jnp.dot(h, w22_ref[...], preferred_element_type=jnp.float32)
    h = jnp.maximum(h + b22_ref[...], 0.0).astype(jnp.bfloat16)
    # fc3 (no activation); narrow un-padded output block, f32
    out = jnp.dot(h, w3_ref[...], preferred_element_type=jnp.float32)
    o_ref[...] = out + b3_ref[...]


@functools.partial(jax.jit, static_argnames=("tile_b",))
def mlp_forward(x, params, *, tile_b=1024):
    """x: (B, n_states) f32.  params: dict of (in,out) weights and (1,out) biases (f32)."""
    B, n_states = x.shape
    n_actions = params["w3"].shape[1]

    # ---- batch tiling -------------------------------------------------------
    tb = min(tile_b, _round_up(B, SUBLANE))
    tb = _round_up(tb, SUBLANE)
    # v7x: if the whole batch fits in one tile, split it so the "parallel" batch
    # axis has >= 2 grid steps and both TensorCores get work. (No-op for tiny B.)
    if B > SUBLANE and _round_up(B, tb) // tb < 2:
        tb = max(SUBLANE, _round_up(-(-B // 2), SUBLANE))
    b_pad = _round_up(B, tb)

    # ---- operand prep (no feature-dim padding; only cheap batch-row padding) --
    xp = x.astype(jnp.float32)
    if b_pad != B:
        xp = jnp.pad(xp, ((0, b_pad - B), (0, 0)))

    w1 = params["w1"].astype(jnp.bfloat16)      # (n_states, hidden)
    w2 = params["w2"].astype(jnp.bfloat16)      # (hidden, hidden)
    w22 = params["w2_2"].astype(jnp.bfloat16)   # (hidden, hidden)
    w3 = params["w3"].astype(jnp.bfloat16)      # (hidden, n_actions)
    b1 = params["b1"].astype(jnp.float32)
    b2 = params["b2"].astype(jnp.float32)
    b22 = params["b2_2"].astype(jnp.float32)
    b3 = params["b3"].astype(jnp.float32)

    # Weights/biases: full-array block, constant index_map -> VMEM-resident, DMA'd once.
    resident = lambda a: pl.BlockSpec(a.shape, lambda i: (0, 0))

    out_padded = pl.pallas_call(
        _mlp_kernel,
        out_shape=jax.ShapeDtypeStruct((b_pad, n_actions), jnp.float32),
        grid=(b_pad // tb,),
        in_specs=[
            # x streams by batch tile; last dim equals the full array dim (legal block).
            pl.BlockSpec((tb, n_states), lambda i: (i, 0)),
            resident(w1), resident(b1),
            resident(w2), resident(b2),
            resident(w22), resident(b22),
            resident(w3), resident(b3),
        ],
        # Narrow un-padded output block: ~32x less write-back than the old 128-wide pad.
        out_specs=pl.BlockSpec((tb, n_actions), lambda i: (i, 0)),
        compiler_params=pltpu.CompilerParams(
            dimension_semantics=("parallel",),
            vmem_limit_bytes=32 * 1024 * 1024,
        ),
    )(xp, w1, b1, w2, b2, w22, b22, w3, b3)

    return out_padded if b_pad == B else out_padded[:B]


def init_params(key, n_states, n_actions, hidden_dim=128):
    """Deterministic PyTorch-Linear-style init (uniform +/- 1/sqrt(fan_in))."""
    def linear(k, fan_in, fan_out):
        kw, kb = jax.random.split(k)
        bound = 1.0 / jnp.sqrt(float(fan_in))
        # stored as (in, out) so the kernel does x @ W
        w = jax.random.uniform(kw, (fan_in, fan_out), jnp.float32, -bound, bound)
        b = jax.random.uniform(kb, (1, fan_out), jnp.float32, -bound, bound)
        return w, b

    k1, k2, k3, k4 = jax.random.split(key, 4)
    w1, b1 = linear(k1, n_states, hidden_dim)
    w2, b2 = linear(k2, hidden_dim, hidden_dim)
    w22, b22 = linear(k3, hidden_dim, hidden_dim)
    w3, b3 = linear(k4, hidden_dim, n_actions)
    return {"w1": w1, "b1": b1,
            "w2": w2, "b2": b2,
            "w2_2": w22, "b2_2": b22,
            "w3": w3, "b3": b3}


def mlp_reference(x, p, matmul_dtype=jnp.float32):
    """Pure-JAX reference. matmul_dtype=bfloat16 mirrors the kernel's MXU math
    (bf16 operands cast at each matmul input, f32 accumulation, f32 bias/ReLU)."""
    def dense(a, w, b):
        y = jnp.dot(a.astype(matmul_dtype), w.astype(matmul_dtype),
                    preferred_element_type=jnp.float32)
        return y + b
    h = jnp.maximum(dense(x, p["w1"], p["b1"]), 0.0)
    h = jnp.maximum(dense(h, p["w2"], p["b2"]), 0.0)
    h = jnp.maximum(dense(h, p["w2_2"], p["b2_2"]), 0.0)
    return dense(h, p["w3"], p["b3"])


if __name__ == "__main__":
    key = jax.random.PRNGKey(0)
    k_params, k_x, k_x2 = jax.random.split(key, 3)

    batch, n_states, n_actions, hidden = 8, 8, 4, 128
    params = init_params(k_params, n_states, n_actions, hidden)

    def check(xv):
        out = jax.block_until_ready(mlp_forward(xv, params))
        assert out.shape == (xv.shape[0], n_actions)
        assert out.dtype == jnp.float32
        # Tight check vs. a reference using the same bf16-operand / f32-accumulate math.
        ref_bf16 = mlp_reference(xv, params, matmul_dtype=jnp.bfloat16)
        assert jnp.allclose(out, ref_bf16, atol=1e-2, rtol=1e-2)
        # Loose sanity check vs. the full-f32 reference (bf16 operand rounding drift).
        ref_f32 = mlp_reference(xv, params, matmul_dtype=jnp.float32)
        assert jnp.allclose(out, ref_f32, atol=5e-2, rtol=5e-2)

    # Single-tile path.
    check(jax.random.normal(k_x, (batch, n_states), dtype=jnp.float32))
    # Multi-tile path (exercises batch-row padding, slicing, and the >=2-step grid split).
    check(jax.random.normal(k_x2, (24, n_states), dtype=jnp.float32))

    print("KERNEL_OK")
</pallas_src>

<mosaic_0001>
module attributes {stable_mosaic.version = 11 : i64} {
  func.func @_mlp_kernel(%arg0: i32, %arg1: memref<8x8xf32, #tpu.memory_space<vmem>>, %arg2: memref<8x128xbf16, #tpu.memory_space<vmem>>, %arg3: memref<1x128xf32, #tpu.memory_space<vmem>>, %arg4: memref<128x128xbf16, #tpu.memory_space<vmem>>, %arg5: memref<1x128xf32, #tpu.memory_space<vmem>>, %arg6: memref<128x128xbf16, #tpu.memory_space<vmem>>, %arg7: memref<1x128xf32, #tpu.memory_space<vmem>>, %arg8: memref<128x4xbf16, #tpu.memory_space<vmem>>, %arg9: memref<1x4xf32, #tpu.memory_space<vmem>>, %arg10: memref<8x4xf32, #tpu.memory_space<vmem>>) attributes {dimension_semantics = [#tpu.dimension_semantics<parallel>], iteration_bounds = array<i64: 1>, scalar_prefetch = 0 : i64, scratch_operands = 0 : i64, tpu.core_type = #tpu.core_type<tc>, window_params = [{transform_indices = @transform_0, window_bounds = array<i64: 8, 8>}, {pipeline_mode = #tpu.pipeline_mode<synchronous>, transform_indices = @transform_1, window_bounds = array<i64: 8, 128>}, {pipeline_mode = #tpu.pipeline_mode<synchronous>, transform_indices = @transform_2, window_bounds = array<i64: 1, 128>}, {pipeline_mode = #tpu.pipeline_mode<synchronous>, transform_indices = @transform_3, window_bounds = array<i64: 128, 128>}, {pipeline_mode = #tpu.pipeline_mode<synchronous>, transform_indices = @transform_4, window_bounds = array<i64: 1, 128>}, {pipeline_mode = #tpu.pipeline_mode<synchronous>, transform_indices = @transform_5, window_bounds = array<i64: 128, 128>}, {pipeline_mode = #tpu.pipeline_mode<synchronous>, transform_indices = @transform_6, window_bounds = array<i64: 1, 128>}, {pipeline_mode = #tpu.pipeline_mode<synchronous>, transform_indices = @transform_7, window_bounds = array<i64: 128, 4>}, {pipeline_mode = #tpu.pipeline_mode<synchronous>, transform_indices = @transform_8, window_bounds = array<i64: 1, 4>}, {transform_indices = @transform_9, window_bounds = array<i64: 8, 4>}]} {
    %c0 = arith.constant 0 : index
    %c0_0 = arith.constant 0 : index
    %0 = vector.load %arg1[%c0, %c0_0] : memref<8x8xf32, #tpu.memory_space<vmem>>, vector<8x8xf32>
    %1 = arith.truncf %0 : vector<8x8xf32> to vector<8x8xbf16>
    %c0_1 = arith.constant 0 : index
    %c0_2 = arith.constant 0 : index
    %2 = vector.load %arg2[%c0_1, %c0_2] : memref<8x128xbf16, #tpu.memory_space<vmem>>, vector<8x128xbf16>
    %cst = arith.constant dense<0.000000e+00> : vector<8x128xf32>
    %3 = tpu.matmul %1, %2, %cst {dimension_numbers = #tpu.dot_dimension_numbers<[1], [0], [0], [1], [0, 0, 1, 1], [], []>} : vector<8x8xbf16>, vector<8x128xbf16>, vector<8x128xf32> -> vector<8x128xf32>
    %c0_3 = arith.constant 0 : index
    %c0_4 = arith.constant 0 : index
    %4 = vector.load %arg3[%c0_3, %c0_4] : memref<1x128xf32, #tpu.memory_space<vmem>>, vector<1x128xf32>
    %5 = vector.broadcast %4 : vector<1x128xf32> to vector<8x128xf32>
    %6 = arith.addf %3, %5 : vector<8x128xf32>
    %cst_5 = arith.constant 0.000000e+00 : f32
    %7 = vector.broadcast %cst_5 : f32 to vector<8x128xf32>
    %8 = arith.maximumf %6, %7 : vector<8x128xf32>
    %9 = arith.truncf %8 : vector<8x128xf32> to vector<8x128xbf16>
    %c0_6 = arith.constant 0 : index
    %c0_7 = arith.constant 0 : index
    %10 = vector.load %arg4[%c0_6, %c0_7] : memref<128x128xbf16, #tpu.memory_space<vmem>>, vector<128x128xbf16>
    %cst_8 = arith.constant dense<0.000000e+00> : vector<8x128xf32>
    %11 = tpu.matmul %9, %10, %cst_8 {dimension_numbers = #tpu.dot_dimension_numbers<[1], [0], [0], [1], [0, 0, 1, 1], [], []>} : vector<8x128xbf16>, vector<128x128xbf16>, vector<8x128xf32> -> vector<8x128xf32>
    %c0_9 = arith.constant 0 : index
    %c0_10 = arith.constant 0 : index
    %12 = vector.load %arg5[%c0_9, %c0_10] : memref<1x128xf32, #tpu.memory_space<vmem>>, vector<1x128xf32>
    %13 = vector.broadcast %12 : vector<1x128xf32> to vector<8x128xf32>
    %14 = arith.addf %11, %13 : vector<8x128xf32>
    %cst_11 = arith.constant 0.000000e+00 : f32
    %15 = vector.broadcast %cst_11 : f32 to vector<8x128xf32>
    %16 = arith.maximumf %14, %15 : vector<8x128xf32>
    %17 = arith.truncf %16 : vector<8x128xf32> to vector<8x128xbf16>
    %c0_12 = arith.constant 0 : index
    %c0_13 = arith.constant 0 : index
    %18 = vector.load %arg6[%c0_12, %c0_13] : memref<128x128xbf16, #tpu.memory_space<vmem>>, vector<128x128xbf16>
    %cst_14 = arith.constant dense<0.000000e+00> : vector<8x128xf32>
    %19 = tpu.matmul %17, %18, %cst_14 {dimension_numbers = #tpu.dot_dimension_numbers<[1], [0], [0], [1], [0, 0, 1, 1], [], []>} : vector<8x128xbf16>, vector<128x128xbf16>, vector<8x128xf32> -> vector<8x128xf32>
    %c0_15 = arith.constant 0 : index
    %c0_16 = arith.constant 0 : index
    %20 = vector.load %arg7[%c0_15, %c0_16] : memref<1x128xf32, #tpu.memory_space<vmem>>, vector<1x128xf32>
    %21 = vector.broadcast %20 : vector<1x128xf32> to vector<8x128xf32>
    %22 = arith.addf %19, %21 : vector<8x128xf32>
    %cst_17 = arith.constant 0.000000e+00 : f32
    %23 = vector.broadcast %cst_17 : f32 to vector<8x128xf32>
    %24 = arith.maximumf %22, %23 : vector<8x128xf32>
    %25 = arith.truncf %24 : vector<8x128xf32> to vector<8x128xbf16>
    %c0_18 = arith.constant 0 : index
    %c0_19 = arith.constant 0 : index
    %26 = vector.load %arg8[%c0_18, %c0_19] : memref<128x4xbf16, #tpu.memory_space<vmem>>, vector<128x4xbf16>
    %cst_20 = arith.constant dense<0.000000e+00> : vector<8x4xf32>
    %27 = tpu.matmul %25, %26, %cst_20 {dimension_numbers = #tpu.dot_dimension_numbers<[1], [0], [0], [1], [0, 0, 1, 1], [], []>} : vector<8x128xbf16>, vector<128x4xbf16>, vector<8x4xf32> -> vector<8x4xf32>
    %c0_21 = arith.constant 0 : index
    %c0_22 = arith.constant 0 : index
    %28 = vector.load %arg9[%c0_21, %c0_22] : memref<1x4xf32, #tpu.memory_space<vmem>>, vector<1x4xf32>
    %29 = vector.broadcast %28 : vector<1x4xf32> to vector<8x4xf32>
    %30 = arith.addf %27, %29 : vector<8x4xf32>
    %c0_23 = arith.constant 0 : index
    %c0_24 = arith.constant 0 : index
    %31 = vector.load %arg10[%c0_23, %c0_24] : memref<8x4xf32, #tpu.memory_space<vmem>>, vector<8x4xf32>
    tpu.vector_store %arg10[%c0_23, %c0_24], %30 {strides = array<i32>} : memref<8x4xf32, #tpu.memory_space<vmem>>, vector<8x4xf32>,
    return
  }
  func.func @transform_0(%arg0: i32) -> (i32, i32) {
    %c0_i32 = arith.constant 0 : i32
    %c0_i32_0 = arith.constant 0 : i32
    return %arg0, %c0_i32 : i32, i32
  }
  func.func @transform_1(%arg0: i32) -> (i32, i32) {
    %c0_i32 = arith.constant 0 : i32
    %c0_i32_0 = arith.constant 0 : i32
    %c0_i32_1 = arith.constant 0 : i32
    return %c0_i32, %c0_i32_0 : i32, i32
  }
  func.func @transform_2(%arg0: i32) -> (i32, i32) {
    %c0_i32 = arith.constant 0 : i32
    %c0_i32_0 = arith.constant 0 : i32
    %c0_i32_1 = arith.constant 0 : i32
    return %c0_i32, %c0_i32_0 : i32, i32
  }
  func.func @transform_3(%arg0: i32) -> (i32, i32) {
    %c0_i32 = arith.constant 0 : i32
    %c0_i32_0 = arith.constant 0 : i32
    %c0_i32_1 = arith.constant 0 : i32
    return %c0_i32, %c0_i32_0 : i32, i32
  }
  func.func @transform_4(%arg0: i32) -> (i32, i32) {
    %c0_i32 = arith.constant 0 : i32
    %c0_i32_0 = arith.constant 0 : i32
    %c0_i32_1 = arith.constant 0 : i32
    return %c0_i32, %c0_i32_0 : i32, i32
  }
  func.func @transform_5(%arg0: i32) -> (i32, i32) {
    %c0_i32 = arith.constant 0 : i32
    %c0_i32_0 = arith.constant 0 : i32
    %c0_i32_1 = arith.constant 0 : i32
    return %c0_i32, %c0_i32_0 : i32, i32
  }
  func.func @transform_6(%arg0: i32) -> (i32, i32) {
    %c0_i32 = arith.constant 0 : i32
    %c0_i32_0 = arith.constant 0 : i32
    %c0_i32_1 = arith.constant 0 : i32
    return %c0_i32, %c0_i32_0 : i32, i32
  }
  func.func @transform_7(%arg0: i32) -> (i32, i32) {
    %c0_i32 = arith.constant 0 : i32
    %c0_i32_0 = arith.constant 0 : i32
    %c0_i32_1 = arith.constant 0 : i32
    return %c0_i32, %c0_i32_0 : i32, i32
  }
  func.func @transform_8(%arg0: i32) -> (i32, i32) {
    %c0_i32 = arith.constant 0 : i32
    %c0_i32_0 = arith.constant 0 : i32
    %c0_i32_1 = arith.constant 0 : i32
    return %c0_i32, %c0_i32_0 : i32, i32
  }
  func.func @transform_9(%arg0: i32) -> (i32, i32) {
    %c0_i32 = arith.constant 0 : i32
    %c0_i32_0 = arith.constant 0 : i32
    return %arg0, %c0_i32 : i32, i32
  }
}

</mosaic_0001>

<bundles_post_ra>
// kernel: mlp_forward.1
= control target key start
LH: loop header
LB: loop body
LE: loop exit
PB: predicated region body
PF: predicated region fallthrough
CT: control target
= control target key end

     0   :  { %vm47_vm0 = vcmask 1043456   ;;  %v586_v0 = vmov 0.0   ;;  %vm587_vm1 = vmmov 0   ;;  %vm43_vm2 = vcmask 64512   ;;  %s764_s1 = inlined_call_operand.vmem [shape: bf16[8,128], index: 1, kind: input, shape index: {}]   ;;  %s765_s0 = inlined_call_operand.vmem [shape: f32[8,8], index: 0, kind: input, shape index: {}]   ;;  %s766_s3 = inlined_call_operand.vmem [shape: bf16[128,128], index: 3, kind: input, shape index: {}]   ;;  %s767_s5 = inlined_call_operand.vmem [shape: bf16[128,128], index: 5, kind: input, shape index: {}]   ;;  %s768_s2 = inlined_call_operand.vmem [shape: f32[1,128], index: 2, kind: input, shape index: {}]   ;;  %s769_s7 = inlined_call_operand.vmem [shape: bf16[128,4], index: 7, kind: input, shape index: {}]   ;;  %s770_s4 = inlined_call_operand.vmem [shape: f32[1,128], index: 4, kind: input, shape index: {}]   ;;  %s771_s6 = inlined_call_operand.vmem [shape: f32[1,128], index: 6, kind: input, shape index: {}]   ;;  %s772_s8 = inlined_call_operand.vmem [shape: f32[1,4], index: 8, kind: input, shape index: {}]   ;;  %s773_s9 = inlined_call_operand.vmem [shape: f32[8,4], index: 9, kind: output, shape index: {}]  }
   0x1   :  { %494 = vmatprep.subr.bf16.mxu0 %v586_v0  ;;  %v35_v1 = vld [vmem:[%s764_s1] sm:$0xf]  ;;  %496 = vmatprep.mubr.msk.bf16.mxu0 %vm587_vm1, %v586_v0  ;;  %v562_v5 = vld [vmem:[%s766_s3 + $0x38] sm:$0xff]   ;;  %v563_v6 = vld [vmem:[%s766_s3 + $0x30] sm:$0xff]   ;;  %vm430_vm3 = vcmask 31744  }
   0x2   :  { %v33_v2 = vld [vmem:[%s765_s0] sm:$0xff]  ;;  %v49_v3 = vsel %vm47_vm0, %v35_v1, 0  ;;  %500 = vmatprep.subr.bf16.mxu1 %v586_v0  ;;  %516 = vmatprep.mubr.msk.bf16.mxu1 %vm587_vm1, %v586_v0  ;;  %v564_v7 = vld [vmem:[%s766_s3 + $0x28] sm:$0xff]   ;;  %v566_v9 = vld [vmem:[%s766_s3 + $0x18] sm:$0xff]  }
   0x3   :  { %v34_v4 = vpack.c.bf16 %v33_v2, %v33_v2  ;;  %495 = vmatpush3.bf16.msra.mxu0 %v49_v3  ;;  %501 = vmatpush3.bf16.msra.mxu1 %v562_v5  ;;  %v565_v8 = vld [vmem:[%s766_s3 + $0x20] sm:$0xff]   ;;  %v567_v10 = vld [vmem:[%s766_s3 + $0x10] sm:$0xff]   ;;  %v568_v11 = vld [vmem:[%s766_s3 + $0x8] sm:$0xff]  }
   0x4   :  { %520 = vmatprep.subr.bf16.mxu0 %v586_v0  ;;  %502 = vmatprep.subr.bf16.mxu1 %v586_v0  ;;  %v569_v12 = vld [vmem:[%s766_s3] sm:$0xff]   ;;  %v570_v13 = vld [vmem:[%s767_s5 + $0x38] sm:$0xff]   ;;  %v571_v14 = vld [vmem:[%s767_s5 + $0x30] sm:$0xff]  }
   0x5   :  { %v572_v15 = vld [vmem:[%s767_s5 + $0x28] sm:$0xff]   ;;  %v573_v16 = vld [vmem:[%s767_s5 + $0x20] sm:$0xff]   ;;  %v574_v17 = vld [vmem:[%s767_s5 + $0x18] sm:$0xff]  }
   0x6   :  { %497 = vmatmul.mubr.msk.bf16.vlgmr.msra.gmra.mxu0 %vm43_vm2, %v34_v4  ;;  %v575_v18 = vld [vmem:[%s767_s5 + $0x10] sm:$0xff]   ;;  %v436_v19 = vld [vmem:[%s768_s2] ss:$0 sm:$0xff]  ;;  %v576_v27 = vld [vmem:[%s767_s5 + $0x8] sm:$0xff]  }
   0x7   :  { %536 = vmatprep.mubr.msk.bf16.mxu0 %vm587_vm1, %v586_v0  ;;  %503 = vmatpush3.bf16.msra.mxu1 %v563_v6  ;;  %v577_v28 = vld [vmem:[%s767_s5] sm:$0xff]   ;;  %v578_v29 = vld [vmem:[%s769_s7 + $0x38] sm:$0xff]   ;;  %v579_v30 = vld [vmem:[%s769_s7 + $0x30] sm:$0xff]  }
   0x8   :  { %504 = vmatprep.subr.bf16.mxu1 %v586_v0  ;;  %521 = vmatpush3.bf16.msra.mxu0 %v570_v13  ;;  %v580_v31 = vld [vmem:[%s769_s7 + $0x28] sm:$0xff]   ;;  %v581_v32 = vld [vmem:[%s769_s7 + $0x20] sm:$0xff]   ;;  %v582_v33 = vld [vmem:[%s769_s7 + $0x18] sm:$0xff]  }
   0x9   :  { %522 = vmatprep.subr.bf16.mxu0 %v586_v0  ;;  %v583_v34 = vld [vmem:[%s769_s7 + $0x10] sm:$0xff]   ;;  %v438_v35 = vld [vmem:[%s770_s4] ss:$0 sm:$0xff]  ;;  %v584_v43 = vld [vmem:[%s769_s7 + $0x8] sm:$0xff]  }
   0xa   :  { %v585_v44 = vld [vmem:[%s769_s7] sm:$0xff]  }
   0xb   :  { %505 = vmatpush3.bf16.msra.mxu1 %v564_v7  ;;  %v447_v45 = vld [vmem:[%s771_s6] ss:$0 sm:$0xff] }
   0xc   :  { %506 = vmatprep.subr.bf16.mxu1 %v586_v0  ;;  %523 = vmatpush3.bf16.msra.mxu0 %v571_v14  ;;  %v456_v53 = vld [vmem:[%s772_s8] ss:$0 sm:$0xff] }
   0xd   :  { %524 = vmatprep.subr.bf16.mxu0 %v586_v0 }
   0xf   :  { %507 = vmatpush3.bf16.msra.mxu1 %v565_v8 }
  0x10   :  { %508 = vmatprep.subr.bf16.mxu1 %v586_v0  ;;  %525 = vmatpush3.bf16.msra.mxu0 %v572_v15 }
  0x11   :  { %526 = vmatprep.subr.bf16.mxu0 %v586_v0 }
  0x13   :  { %509 = vmatpush3.bf16.msra.mxu1 %v566_v9 }
  0x14   :  { %510 = vmatprep.subr.bf16.mxu1 %v586_v0  ;;  %527 = vmatpush3.bf16.msra.mxu0 %v573_v16 }
  0x15   :  { %528 = vmatprep.subr.bf16.mxu0 %v586_v0 }
  0x17   :  { %511 = vmatpush3.bf16.msra.mxu1 %v567_v10 }
  0x18   :  { %512 = vmatprep.subr.bf16.mxu1 %v586_v0  ;;  %529 = vmatpush3.bf16.msra.mxu0 %v574_v17 }
  0x19   :  { %530 = vmatprep.subr.bf16.mxu0 %v586_v0 }
  0x1b   :  { %513 = vmatpush3.bf16.msra.mxu1 %v568_v11 }
  0x1c   :  { %514 = vmatprep.subr.bf16.mxu1 %v586_v0  ;;  %531 = vmatpush3.bf16.msra.mxu0 %v575_v18 }
  0x1d   :  { %532 = vmatprep.subr.bf16.mxu0 %v586_v0 }
  0x1f   :  { %515 = vmatpush3.bf16.msra.mxu1 %v569_v12 }
  0x20   :  { %540 = vmatprep.subr.bf16.mxu1 %v586_v0  ;;  %533 = vmatpush3.bf16.msra.mxu0 %v576_v27 }
  0x21   :  { %534 = vmatprep.subr.bf16.mxu0 %v586_v0 }
  0x24   :  { %535 = vmatpush3.bf16.msra.mxu0 %v577_v28 }
  0xc6   :  { %v85_v20 = vpop.f32.mrf.mxu0 }
  0xc7   :  { %v86_v21 = vadd.f32 %v436_v19, %v85_v20 }
  0xc8   :  { %v498_v22 = vpop.f32.mrf.mxu0 }
  0xc9   :  { %v91_v23 = vmax.f32 %v86_v21, 0.0 }
  0xca   :  { %v88_v24 = vpop.f32.mrf.mxu0 }
  0xcb   :  { %v92_v25 = vpack.c.bf16 %v91_v23, %v91_v23 }
  0xcc   :  { %v499_v26 = vpop.f32.mrf.mxu0 }
  0xcd   :  { %517 = vmatmul.mubr.bf16.vlgmr.msra.gmra.mxu1 %v92_v25 }
  0xce   :  { %556 = vmatprep.mubr.msk.bf16.mxu1 %vm587_vm1, %v586_v0  ;;  %541 = vmatpush3.bf16.msra.mxu1 %v578_v29 }
  0xcf   :  { %542 = vmatprep.subr.bf16.mxu1 %v586_v0 }
  0xd2   :  { %543 = vmatpush3.bf16.msra.mxu1 %v579_v30 }
  0xd3   :  { %544 = vmatprep.subr.bf16.mxu1 %v586_v0 }
  0xd6   :  { %545 = vmatpush3.bf16.msra.mxu1 %v580_v31 }
  0xd7   :  { %546 = vmatprep.subr.bf16.mxu1 %v586_v0 }
  0xda   :  { %547 = vmatpush3.bf16.msra.mxu1 %v581_v32 }
  0xdb   :  { %548 = vmatprep.subr.bf16.mxu1 %v586_v0 }
  0xde   :  { %549 = vmatpush3.bf16.msra.mxu1 %v582_v33 }
  0xdf   :  { %550 = vmatprep.subr.bf16.mxu1 %v586_v0 }
  0xe2   :  { %551 = vmatpush3.bf16.msra.mxu1 %v583_v34 }
  0xe3   :  { %552 = vmatprep.subr.bf16.mxu1 %v586_v0 }
  0xe6   :  { %553 = vmatpush3.bf16.msra.mxu1 %v584_v43 }
  0xe7   :  { %554 = vmatprep.subr.bf16.mxu1 %v586_v0 }
  0xea   :  { %555 = vmatpush3.bf16.msra.mxu1 %v585_v44 }
 0x18d   :  { %v198_v36 = vpop.f32.mrf.mxu1 }
 0x18e   :  { %v199_v37 = vadd.f32 %v438_v35, %v198_v36 }
 0x18f   :  { %v518_v38 = vpop.f32.mrf.mxu1 }
 0x190   :  { %v204_v39 = vmax.f32 %v199_v37, 0.0 }
 0x191   :  { %v201_v40 = vpop.f32.mrf.mxu1 }
 0x192   :  { %v205_v41 = vpack.c.bf16 %v204_v39, %v204_v39 }
 0x193   :  { %v519_v42 = vpop.f32.mrf.mxu1 }
 0x194   :  { %537 = vmatmul.mubr.bf16.vlgmr.msra.gmra.mxu0 %v205_v41 }
 0x254   :  { %v311_v46 = vpop.f32.mrf.mxu0 }
 0x255   :  { %v312_v47 = vadd.f32 %v447_v45, %v311_v46 }
 0x256   :  { %v538_v48 = vpop.f32.mrf.mxu0 }
 0x257   :  { %v317_v49 = vmax.f32 %v312_v47, 0.0 }
 0x258   :  { %v314_v50 = vpop.f32.mrf.mxu0 }
 0x259   :  { %v318_v51 = vpack.c.bf16 %v317_v49, %v317_v49 }
 0x25a   :  { %v539_v52 = vpop.f32.mrf.mxu0 }
 0x25b   :  { %557 = vmatmul.mubr.bf16.vlgmr.msra.gmra.mxu1 %v318_v51 }
 0x31b   :  { %v424_v54 = vpop.f32.mrf.mxu1 }
 0x31c   :  { %v425_v55 = vadd.f32 %v456_v53, %v424_v54 }
 0x31d   :  { %v558_v56 = vpop.f32.mrf.mxu1 }
 0x31e   :  { %431 = vst.msk [vmem:[%s773_s9] sm:$0xff] %vm430_vm3, %v425_v55 }
 0x31f   :  { %v427_v57 = vpop.f32.mrf.mxu1 }
 0x321   :  { %v559_v58 = vpop.f32.mrf.mxu1 }

</bundles_post_ra>
